<compile_context>
chip_gen: v7x
topology: tpu7x:2x2x1
jax: 0.10.0
libtpu: 0.0.40
codegen_flags: <defaults>
</compile_context>

<pallas_src>
import functools

import jax
import jax.numpy as jnp
from jax.experimental import pallas as pl
from jax.experimental.pallas import tpu as pltpu


def _round_up(n, m):
    return ((n + m - 1) // m) * m


def _vmem_limit_bytes():
    """Per-generation scoped-VMEM budget with a safe fallback."""
    try:
        cap = int(pltpu.get_tpu_info().vmem_capacity_bytes)
    except Exception:
        return 32 * 1024 * 1024               # conservative: safe on every gen
    # ~48 MiB on v7x (64 MiB physical), 96 MiB on v5e/v6e (128 MiB physical).
    return min((cap * 3) // 4, 96 * 1024 * 1024)


# ---------------------------------------------------------------------------
# Fused kernel: per grid step, project tile_t timesteps in one MXU matmul,
# then run the serial recurrence h_t = tanh(proj[t] + h_{t-1} @ W_hh).
# ---------------------------------------------------------------------------
def _rnn_fused_kernel(x_ref, wxh_ref, whh_ref, bh_ref, out_ref,
                      proj_scr, h_scr, *, compute_dtype, unroll):
    t = pl.program_id(1)                      # time-block axis (inner, serial)

    @pl.when(t == 0)
    def _():                                  # state = 0  (PyTorch `state=None`)
        h_scr[...] = jnp.zeros_like(h_scr)

    tt, bb, i = x_ref.shape
    hp = out_ref.shape[-1]

    # Fused input projection for the whole tile: one (tt*bb, I)@(I, Hp) MXU
    # matmul (f32 accumulate), bias folded in; result never leaves VMEM.
    x2 = x_ref[...].reshape(tt * bb, i)
    proj = jnp.dot(x2, wxh_ref[...], preferred_element_type=jnp.float32)
    proj_scr[...] = proj.reshape(tt, bb, hp) + bh_ref[...]

    whh = whh_ref[...]                        # (Hp, Hp) weight, VMEM-resident
    h0 = h_scr[...]                           # carry (f32)

    def step(k, h):
        h_new = jnp.tanh(
            proj_scr[k]
            + jnp.dot(h.astype(compute_dtype), whh,
                      preferred_element_type=jnp.float32)
        )
        out_ref[k] = h_new.astype(out_ref.dtype)
        return h_new

    h = jax.lax.fori_loop(0, tt, step, h0, unroll=unroll)
    h_scr[...] = h                            # one carry store per tile


def rnn_scratch_forward(x, W_xh, W_hh, b_h, *,
                        compute_dtype=jnp.bfloat16,  # bf16 MXU operands, f32 acc
                        batch_blocks=1,              # 2 = v7x dual-TensorCore split
                        time_tile=16):
    """Pallas equivalent of RNNScratch.forward (state=None).

    x: (seq_len, batch, num_inputs) -> (outputs (T,B,H), state (B,H)).
    """
    T, B, I = x.shape
    H = W_xh.shape[1]

    # Only split across TensorCores when each core gets a throughput-bound chunk.
    if batch_blocks > 1 and -(-B // batch_blocks) < 64:
        batch_blocks = 1

    # Pad: batch -> sublane multiple (16 for 16-bit compute), hidden -> 128 (lane),
    # time -> multiple of tile_t (avoids the tile_t=1 cliff for awkward T).
    sub = 8 if jnp.dtype(compute_dtype).itemsize == 4 else 16
    BB = _round_up(-(-B // batch_blocks), sub)       # batch rows per grid block
    Bp = BB * batch_blocks
    Hp = _round_up(H, 128)
    tile_t = max(1, min(time_tile, T))
    Tp = _round_up(T, tile_t)
    unroll = min(8, tile_t)

    x_p = jnp.pad(x, ((0, Tp - T), (0, Bp - B), (0, 0))).astype(compute_dtype)
    wxh_p = jnp.pad(W_xh, ((0, 0), (0, Hp - H))).astype(compute_dtype)
    whh_p = jnp.pad(W_hh, ((0, Hp - H), (0, Hp - H))).astype(compute_dtype)
    bh_p = jnp.pad(b_h, (0, Hp - H)).reshape(1, Hp).astype(jnp.float32)

    out_dtype = x.dtype
    kernel = functools.partial(_rnn_fused_kernel,
                               compute_dtype=compute_dtype, unroll=unroll)

    outputs = pl.pallas_call(
        kernel,
        out_shape=jax.ShapeDtypeStruct((Tp, Bp, Hp), out_dtype),
        grid_spec=pltpu.PrefetchScalarGridSpec(
            num_scalar_prefetch=0,
            grid=(batch_blocks, Tp // tile_t),
            in_specs=[
                pl.BlockSpec((tile_t, BB, I), lambda b, t: (t, b, 0)),  # x tile
                pl.BlockSpec((I, Hp), lambda b, t: (0, 0)),             # W_xh (resident)
                pl.BlockSpec((Hp, Hp), lambda b, t: (0, 0)),            # W_hh (resident)
                pl.BlockSpec((1, Hp), lambda b, t: (0, 0)),             # b_h  (resident)
            ],
            out_specs=pl.BlockSpec((tile_t, BB, Hp), lambda b, t: (t, b, 0)),
            scratch_shapes=[
                pltpu.VMEM((tile_t, BB, Hp), jnp.float32),  # fused proj (stays on-chip)
                pltpu.VMEM((BB, Hp), jnp.float32),          # hidden carry
            ],
        ),
        compiler_params=pltpu.CompilerParams(
            dimension_semantics=("parallel", "arbitrary"),
            vmem_limit_bytes=_vmem_limit_bytes(),
        ),
    )(x_p, wxh_p, whh_p, bh_p)

    outputs = outputs[:T, :B, :H]
    state = outputs[T - 1]                    # padded timesteps can't touch state
    return outputs, state


def rnn_scratch_reference(x, W_xh, W_hh, b_h):
    """Pure-JAX reference mirroring the PyTorch loop."""
    T, B, _ = x.shape
    H = W_xh.shape[1]
    state = jnp.zeros((B, H), dtype=x.dtype)
    outs = []
    for t in range(T):
        state = jnp.tanh(x[t] @ W_xh + state @ W_hh + b_h)
        outs.append(state)
    return jnp.stack(outs, axis=0), state


if __name__ == "__main__":
    # Deterministic params mirroring RNNScratch.__init__ (randn * sigma).
    seq_len, batch, num_inputs, num_hiddens = 8, 4, 16, 32
    sigma = 0.01

    key = jax.random.PRNGKey(0)
    k_x, k_wxh, k_whh, k_b = jax.random.split(key, 4)

    x = jax.random.normal(k_x, (seq_len, batch, num_inputs), dtype=jnp.float32)
    W_xh = jax.random.normal(k_wxh, (num_inputs, num_hiddens), dtype=jnp.float32) * sigma
    W_hh = jax.random.normal(k_whh, (num_hiddens, num_hiddens), dtype=jnp.float32) * sigma
    b_h = jax.random.normal(k_b, (num_hiddens,), dtype=jnp.float32) * sigma

    # Exact f32 check (compute_dtype overridden to f32).
    out_f32, st_f32 = rnn_scratch_forward(x, W_xh, W_hh, b_h,
                                          compute_dtype=jnp.float32)
    jax.block_until_ready((out_f32, st_f32))
    ref_out, ref_st = rnn_scratch_reference(x, W_xh, W_hh, b_h)
    assert out_f32.shape == (seq_len, batch, num_hiddens)
    assert st_f32.shape == (batch, num_hiddens)
    assert jnp.allclose(out_f32, ref_out, atol=1e-5, rtol=1e-5)
    assert jnp.allclose(st_f32, ref_st, atol=1e-5, rtol=1e-5)

    # Default bf16 MXU path (f32 accumulation), awkward T (exercises time
    # padding) and a batch large enough to pass the dual-TensorCore gate.
    T2, B2 = 13, 128
    x2 = jax.random.normal(k_x, (T2, B2, num_inputs), dtype=jnp.float32)
    out_bf, st_bf = rnn_scratch_forward(x2, W_xh, W_hh, b_h,
                                        batch_blocks=2, time_tile=16)
    jax.block_until_ready((out_bf, st_bf))
    ref_out2, ref_st2 = rnn_scratch_reference(x2, W_xh, W_hh, b_h)
    assert out_bf.shape == (T2, B2, num_hiddens)
    assert jnp.allclose(out_bf, ref_out2, atol=5e-3, rtol=5e-2)
    assert jnp.allclose(st_bf, ref_st2, atol=5e-3, rtol=5e-2)

    print("KERNEL_OK")
</pallas_src>

<mosaic_0001>
module attributes {stable_mosaic.version = 11 : i64} {
  func.func @_rnn_fused_kernel(%arg0: i32, %arg1: i32, %arg2: memref<8x8x16xf32, #tpu.memory_space<vmem>>, %arg3: memref<16x128xf32, #tpu.memory_space<vmem>>, %arg4: memref<128x128xf32, #tpu.memory_space<vmem>>, %arg5: memref<1x128xf32, #tpu.memory_space<vmem>>, %arg6: memref<8x8x128xf32, #tpu.memory_space<vmem>>, %arg7: memref<8x8x128xf32, #tpu.memory_space<vmem>>, %arg8: memref<8x128xf32, #tpu.memory_space<vmem>>) attributes {dimension_semantics = [#tpu.dimension_semantics<parallel>, #tpu.dimension_semantics<arbitrary>], iteration_bounds = array<i64: 1, 1>, scalar_prefetch = 0 : i64, scratch_operands = 2 : i64, tpu.core_type = #tpu.core_type<tc>, window_params = [{transform_indices = @transform_0, window_bounds = array<i64: 8, 8, 16>}, {pipeline_mode = #tpu.pipeline_mode<synchronous>, transform_indices = @transform_1, window_bounds = array<i64: 16, 128>}, {pipeline_mode = #tpu.pipeline_mode<synchronous>, transform_indices = @transform_2, window_bounds = array<i64: 128, 128>}, {pipeline_mode = #tpu.pipeline_mode<synchronous>, transform_indices = @transform_3, window_bounds = array<i64: 1, 128>}, {transform_indices = @transform_4, window_bounds = array<i64: 8, 8, 128>}]} {
    %c0_i32 = arith.constant 0 : i32
    %0 = arith.cmpi eq, %arg1, %c0_i32 : i32
    %1 = arith.extui %0 : i1 to i32
    %c0_i32_0 = arith.constant 0 : i32
    %2 = arith.cmpi ne, %1, %c0_i32_0 : i32
    scf.if %2 {
      %cst_57 = arith.constant 0.000000e+00 : f32
      %96 = vector.broadcast %cst_57 : f32 to vector<8x128xf32>
      %c0_58 = arith.constant 0 : index
      %c0_59 = arith.constant 0 : index
      %97 = vector.load %arg8[%c0_58, %c0_59] : memref<8x128xf32, #tpu.memory_space<vmem>>, vector<8x128xf32>
      tpu.vector_store %arg8[%c0_58, %c0_59], %96 {strides = array<i32>} : memref<8x128xf32, #tpu.memory_space<vmem>>, vector<8x128xf32>,
    } else {
    }
    %c0 = arith.constant 0 : index
    %c0_1 = arith.constant 0 : index
    %c0_2 = arith.constant 0 : index
    %3 = vector.load %arg2[%c0, %c0_1, %c0_2] : memref<8x8x16xf32, #tpu.memory_space<vmem>>, vector<8x8x16xf32>
    %4 = vector.shape_cast %3 : vector<8x8x16xf32> to vector<64x16xf32>
    %c0_3 = arith.constant 0 : index
    %c0_4 = arith.constant 0 : index
    %5 = vector.load %arg3[%c0_3, %c0_4] : memref<16x128xf32, #tpu.memory_space<vmem>>, vector<16x128xf32>
    %cst = arith.constant dense<0.000000e+00> : vector<64x128xf32>
    %6 = tpu.matmul %4, %5, %cst {dimension_numbers = #tpu.dot_dimension_numbers<[1], [0], [0], [1], [0, 0, 1, 1], [], []>} : vector<64x16xf32>, vector<16x128xf32>, vector<64x128xf32> -> vector<64x128xf32>
    %7 = vector.shape_cast %6 : vector<64x128xf32> to vector<8x8x128xf32>
    %c0_5 = arith.constant 0 : index
    %c0_6 = arith.constant 0 : index
    %8 = vector.load %arg5[%c0_5, %c0_6] : memref<1x128xf32, #tpu.memory_space<vmem>>, vector<1x128xf32>
    %9 = vector.shape_cast %8 : vector<1x128xf32> to vector<1x1x128xf32>
    %10 = vector.broadcast %9 : vector<1x1x128xf32> to vector<8x8x128xf32>
    %11 = arith.addf %7, %10 : vector<8x8x128xf32>
    %c0_7 = arith.constant 0 : index
    %c0_8 = arith.constant 0 : index
    %c0_9 = arith.constant 0 : index
    %12 = vector.load %arg7[%c0_7, %c0_8, %c0_9] : memref<8x8x128xf32, #tpu.memory_space<vmem>>, vector<8x8x128xf32>
    tpu.vector_store %arg7[%c0_7, %c0_8, %c0_9], %11 {strides = array<i32>} : memref<8x8x128xf32, #tpu.memory_space<vmem>>, vector<8x8x128xf32>,
    %c0_10 = arith.constant 0 : index
    %c0_11 = arith.constant 0 : index
    %13 = vector.load %arg4[%c0_10, %c0_11] : memref<128x128xf32, #tpu.memory_space<vmem>>, vector<128x128xf32>
    %c0_12 = arith.constant 0 : index
    %c0_13 = arith.constant 0 : index
    %14 = vector.load %arg8[%c0_12, %c0_13] : memref<8x128xf32, #tpu.memory_space<vmem>>, vector<8x128xf32>
    %c0_i32_14 = arith.constant 0 : i32
    %15 = arith.index_cast %c0_i32_14 : i32 to index
    %c0_15 = arith.constant 0 : index
    %c0_16 = arith.constant 0 : index
    %16 = vector.load %arg7[%15, %c0_15, %c0_16] : memref<8x8x128xf32, #tpu.memory_space<vmem>>, vector<1x8x128xf32>
    %17 = vector.shape_cast %16 : vector<1x8x128xf32> to vector<8x128xf32>
    %cst_17 = arith.constant dense<0.000000e+00> : vector<8x128xf32>
    %18 = tpu.matmul %14, %13, %cst_17 {dimension_numbers = #tpu.dot_dimension_numbers<[1], [0], [0], [1], [0, 0, 1, 1], [], []>} : vector<8x128xf32>, vector<128x128xf32>, vector<8x128xf32> -> vector<8x128xf32>
    %19 = arith.addf %17, %18 : vector<8x128xf32>
    %20 = math.tanh %19 : vector<8x128xf32>
    %21 = arith.index_cast %c0_i32_14 : i32 to index
    %c0_18 = arith.constant 0 : index
    %c0_19 = arith.constant 0 : index
    %22 = vector.load %arg6[%21, %c0_18, %c0_19] : memref<8x8x128xf32, #tpu.memory_space<vmem>>, vector<1x8x128xf32>
    %23 = vector.shape_cast %22 : vector<1x8x128xf32> to vector<8x128xf32>
    %24 = vector.shape_cast %20 : vector<8x128xf32> to vector<1x8x128xf32>
    tpu.vector_store %arg6[%21, %c0_18, %c0_19], %24 {strides = array<i32>} : memref<8x8x128xf32, #tpu.memory_space<vmem>>, vector<1x8x128xf32>,
    %c1_i32 = arith.constant 1 : i32
    %25 = arith.index_cast %c1_i32 : i32 to index
    %c0_20 = arith.constant 0 : index
    %c0_21 = arith.constant 0 : index
    %26 = vector.load %arg7[%25, %c0_20, %c0_21] : memref<8x8x128xf32, #tpu.memory_space<vmem>>, vector<1x8x128xf32>
    %27 = vector.shape_cast %26 : vector<1x8x128xf32> to vector<8x128xf32>
    %cst_22 = arith.constant dense<0.000000e+00> : vector<8x128xf32>
    %28 = tpu.matmul %20, %13, %cst_22 {dimension_numbers = #tpu.dot_dimension_numbers<[1], [0], [0], [1], [0, 0, 1, 1], [], []>} : vector<8x128xf32>, vector<128x128xf32>, vector<8x128xf32> -> vector<8x128xf32>
    %29 = arith.addf %27, %28 : vector<8x128xf32>
    %30 = math.tanh %29 : vector<8x128xf32>
    %31 = arith.index_cast %c1_i32 : i32 to index
    %c0_23 = arith.constant 0 : index
    %c0_24 = arith.constant 0 : index
    %32 = vector.load %arg6[%31, %c0_23, %c0_24] : memref<8x8x128xf32, #tpu.memory_space<vmem>>, vector<1x8x128xf32>
    %33 = vector.shape_cast %32 : vector<1x8x128xf32> to vector<8x128xf32>
    %34 = vector.shape_cast %30 : vector<8x128xf32> to vector<1x8x128xf32>
    tpu.vector_store %arg6[%31, %c0_23, %c0_24], %34 {strides = array<i32>} : memref<8x8x128xf32, #tpu.memory_space<vmem>>, vector<1x8x128xf32>,
    %c2_i32 = arith.constant 2 : i32
    %35 = arith.index_cast %c2_i32 : i32 to index
    %c0_25 = arith.constant 0 : index
    %c0_26 = arith.constant 0 : index
    %36 = vector.load %arg7[%35, %c0_25, %c0_26] : memref<8x8x128xf32, #tpu.memory_space<vmem>>, vector<1x8x128xf32>
    %37 = vector.shape_cast %36 : vector<1x8x128xf32> to vector<8x128xf32>
    %cst_27 = arith.constant dense<0.000000e+00> : vector<8x128xf32>
    %38 = tpu.matmul %30, %13, %cst_27 {dimension_numbers = #tpu.dot_dimension_numbers<[1], [0], [0], [1], [0, 0, 1, 1], [], []>} : vector<8x128xf32>, vector<128x128xf32>, vector<8x128xf32> -> vector<8x128xf32>
    %39 = arith.addf %37, %38 : vector<8x128xf32>
    %40 = math.tanh %39 : vector<8x128xf32>
    %41 = arith.index_cast %c2_i32 : i32 to index
    %c0_28 = arith.constant 0 : index
    %c0_29 = arith.constant 0 : index
    %42 = vector.load %arg6[%41, %c0_28, %c0_29] : memref<8x8x128xf32, #tpu.memory_space<vmem>>, vector<1x8x128xf32>
    %43 = vector.shape_cast %42 : vector<1x8x128xf32> to vector<8x128xf32>
    %44 = vector.shape_cast %40 : vector<8x128xf32> to vector<1x8x128xf32>
    tpu.vector_store %arg6[%41, %c0_28, %c0_29], %44 {strides = array<i32>} : memref<8x8x128xf32, #tpu.memory_space<vmem>>, vector<1x8x128xf32>,
    %c3_i32 = arith.constant 3 : i32
    %45 = arith.index_cast %c3_i32 : i32 to index
    %c0_30 = arith.constant 0 : index
    %c0_31 = arith.constant 0 : index
    %46 = vector.load %arg7[%45, %c0_30, %c0_31] : memref<8x8x128xf32, #tpu.memory_space<vmem>>, vector<1x8x128xf32>
    %47 = vector.shape_cast %46 : vector<1x8x128xf32> to vector<8x128xf32>
    %cst_32 = arith.constant dense<0.000000e+00> : vector<8x128xf32>
    %48 = tpu.matmul %40, %13, %cst_32 {dimension_numbers = #tpu.dot_dimension_numbers<[1], [0], [0], [1], [0, 0, 1, 1], [], []>} : vector<8x128xf32>, vector<128x128xf32>, vector<8x128xf32> -> vector<8x128xf32>
    %49 = arith.addf %47, %48 : vector<8x128xf32>
    %50 = math.tanh %49 : vector<8x128xf32>
    %51 = arith.index_cast %c3_i32 : i32 to index
    %c0_33 = arith.constant 0 : index
    %c0_34 = arith.constant 0 : index
    %52 = vector.load %arg6[%51, %c0_33, %c0_34] : memref<8x8x128xf32, #tpu.memory_space<vmem>>, vector<1x8x128xf32>
    %53 = vector.shape_cast %52 : vector<1x8x128xf32> to vector<8x128xf32>
    %54 = vector.shape_cast %50 : vector<8x128xf32> to vector<1x8x128xf32>
    tpu.vector_store %arg6[%51, %c0_33, %c0_34], %54 {strides = array<i32>} : memref<8x8x128xf32, #tpu.memory_space<vmem>>, vector<1x8x128xf32>,
    %c4_i32 = arith.constant 4 : i32
    %55 = arith.index_cast %c4_i32 : i32 to index
    %c0_35 = arith.constant 0 : index
    %c0_36 = arith.constant 0 : index
    %56 = vector.load %arg7[%55, %c0_35, %c0_36] : memref<8x8x128xf32, #tpu.memory_space<vmem>>, vector<1x8x128xf32>
    %57 = vector.shape_cast %56 : vector<1x8x128xf32> to vector<8x128xf32>
    %cst_37 = arith.constant dense<0.000000e+00> : vector<8x128xf32>
    %58 = tpu.matmul %50, %13, %cst_37 {dimension_numbers = #tpu.dot_dimension_numbers<[1], [0], [0], [1], [0, 0, 1, 1], [], []>} : vector<8x128xf32>, vector<128x128xf32>, vector<8x128xf32> -> vector<8x128xf32>
    %59 = arith.addf %57, %58 : vector<8x128xf32>
    %60 = math.tanh %59 : vector<8x128xf32>
    %61 = arith.index_cast %c4_i32 : i32 to index
    %c0_38 = arith.constant 0 : index
    %c0_39 = arith.constant 0 : index
    %62 = vector.load %arg6[%61, %c0_38, %c0_39] : memref<8x8x128xf32, #tpu.memory_space<vmem>>, vector<1x8x128xf32>
    %63 = vector.shape_cast %62 : vector<1x8x128xf32> to vector<8x128xf32>
    %64 = vector.shape_cast %60 : vector<8x128xf32> to vector<1x8x128xf32>
    tpu.vector_store %arg6[%61, %c0_38, %c0_39], %64 {strides = array<i32>} : memref<8x8x128xf32, #tpu.memory_space<vmem>>, vector<1x8x128xf32>,
    %c5_i32 = arith.constant 5 : i32
    %65 = arith.index_cast %c5_i32 : i32 to index
    %c0_40 = arith.constant 0 : index
    %c0_41 = arith.constant 0 : index
    %66 = vector.load %arg7[%65, %c0_40, %c0_41] : memref<8x8x128xf32, #tpu.memory_space<vmem>>, vector<1x8x128xf32>
    %67 = vector.shape_cast %66 : vector<1x8x128xf32> to vector<8x128xf32>
    %cst_42 = arith.constant dense<0.000000e+00> : vector<8x128xf32>
    %68 = tpu.matmul %60, %13, %cst_42 {dimension_numbers = #tpu.dot_dimension_numbers<[1], [0], [0], [1], [0, 0, 1, 1], [], []>} : vector<8x128xf32>, vector<128x128xf32>, vector<8x128xf32> -> vector<8x128xf32>
    %69 = arith.addf %67, %68 : vector<8x128xf32>
    %70 = math.tanh %69 : vector<8x128xf32>
    %71 = arith.index_cast %c5_i32 : i32 to index
    %c0_43 = arith.constant 0 : index
    %c0_44 = arith.constant 0 : index
    %72 = vector.load %arg6[%71, %c0_43, %c0_44] : memref<8x8x128xf32, #tpu.memory_space<vmem>>, vector<1x8x128xf32>
    %73 = vector.shape_cast %72 : vector<1x8x128xf32> to vector<8x128xf32>
    %74 = vector.shape_cast %70 : vector<8x128xf32> to vector<1x8x128xf32>
    tpu.vector_store %arg6[%71, %c0_43, %c0_44], %74 {strides = array<i32>} : memref<8x8x128xf32, #tpu.memory_space<vmem>>, vector<1x8x128xf32>,
    %c6_i32 = arith.constant 6 : i32
    %75 = arith.index_cast %c6_i32 : i32 to index
    %c0_45 = arith.constant 0 : index
    %c0_46 = arith.constant 0 : index
    %76 = vector.load %arg7[%75, %c0_45, %c0_46] : memref<8x8x128xf32, #tpu.memory_space<vmem>>, vector<1x8x128xf32>
    %77 = vector.shape_cast %76 : vector<1x8x128xf32> to vector<8x128xf32>
    %cst_47 = arith.constant dense<0.000000e+00> : vector<8x128xf32>
    %78 = tpu.matmul %70, %13, %cst_47 {dimension_numbers = #tpu.dot_dimension_numbers<[1], [0], [0], [1], [0, 0, 1, 1], [], []>} : vector<8x128xf32>, vector<128x128xf32>, vector<8x128xf32> -> vector<8x128xf32>
    %79 = arith.addf %77, %78 : vector<8x128xf32>
    %80 = math.tanh %79 : vector<8x128xf32>
    %81 = arith.index_cast %c6_i32 : i32 to index
    %c0_48 = arith.constant 0 : index
    %c0_49 = arith.constant 0 : index
    %82 = vector.load %arg6[%81, %c0_48, %c0_49] : memref<8x8x128xf32, #tpu.memory_space<vmem>>, vector<1x8x128xf32>
    %83 = vector.shape_cast %82 : vector<1x8x128xf32> to vector<8x128xf32>
    %84 = vector.shape_cast %80 : vector<8x128xf32> to vector<1x8x128xf32>
    tpu.vector_store %arg6[%81, %c0_48, %c0_49], %84 {strides = array<i32>} : memref<8x8x128xf32, #tpu.memory_space<vmem>>, vector<1x8x128xf32>,
    %c7_i32 = arith.constant 7 : i32
    %85 = arith.index_cast %c7_i32 : i32 to index
    %c0_50 = arith.constant 0 : index
    %c0_51 = arith.constant 0 : index
    %86 = vector.load %arg7[%85, %c0_50, %c0_51] : memref<8x8x128xf32, #tpu.memory_space<vmem>>, vector<1x8x128xf32>
    %87 = vector.shape_cast %86 : vector<1x8x128xf32> to vector<8x128xf32>
    %cst_52 = arith.constant dense<0.000000e+00> : vector<8x128xf32>
    %88 = tpu.matmul %80, %13, %cst_52 {dimension_numbers = #tpu.dot_dimension_numbers<[1], [0], [0], [1], [0, 0, 1, 1], [], []>} : vector<8x128xf32>, vector<128x128xf32>, vector<8x128xf32> -> vector<8x128xf32>
    %89 = arith.addf %87, %88 : vector<8x128xf32>
    %90 = math.tanh %89 : vector<8x128xf32>
    %91 = arith.index_cast %c7_i32 : i32 to index
    %c0_53 = arith.constant 0 : index
    %c0_54 = arith.constant 0 : index
    %92 = vector.load %arg6[%91, %c0_53, %c0_54] : memref<8x8x128xf32, #tpu.memory_space<vmem>>, vector<1x8x128xf32>
    %93 = vector.shape_cast %92 : vector<1x8x128xf32> to vector<8x128xf32>
    %94 = vector.shape_cast %90 : vector<8x128xf32> to vector<1x8x128xf32>
    tpu.vector_store %arg6[%91, %c0_53, %c0_54], %94 {strides = array<i32>} : memref<8x8x128xf32, #tpu.memory_space<vmem>>, vector<1x8x128xf32>,
    %c8_i32 = arith.constant 8 : i32
    %c0_55 = arith.constant 0 : index
    %c0_56 = arith.constant 0 : index
    %95 = vector.load %arg8[%c0_55, %c0_56] : memref<8x128xf32, #tpu.memory_space<vmem>>, vector<8x128xf32>
    tpu.vector_store %arg8[%c0_55, %c0_56], %90 {strides = array<i32>} : memref<8x128xf32, #tpu.memory_space<vmem>>, vector<8x128xf32>,
    return
  }
  func.func @transform_0(%arg0: i32, %arg1: i32) -> (i32, i32, i32) {
    %c0_i32 = arith.constant 0 : i32
    %c0_i32_0 = arith.constant 0 : i32
    return %arg1, %arg0, %c0_i32 : i32, i32, i32
  }
  func.func @transform_1(%arg0: i32, %arg1: i32) -> (i32, i32) {
    %c0_i32 = arith.constant 0 : i32
    %c0_i32_0 = arith.constant 0 : i32
    %c0_i32_1 = arith.constant 0 : i32
    return %c0_i32, %c0_i32_0 : i32, i32
  }
  func.func @transform_2(%arg0: i32, %arg1: i32) -> (i32, i32) {
    %c0_i32 = arith.constant 0 : i32
    %c0_i32_0 = arith.constant 0 : i32
    %c0_i32_1 = arith.constant 0 : i32
    return %c0_i32, %c0_i32_0 : i32, i32
  }
  func.func @transform_3(%arg0: i32, %arg1: i32) -> (i32, i32) {
    %c0_i32 = arith.constant 0 : i32
    %c0_i32_0 = arith.constant 0 : i32
    %c0_i32_1 = arith.constant 0 : i32
    return %c0_i32, %c0_i32_0 : i32, i32
  }
  func.func @transform_4(%arg0: i32, %arg1: i32) -> (i32, i32, i32) {
    %c0_i32 = arith.constant 0 : i32
    %c0_i32_0 = arith.constant 0 : i32
    return %arg1, %arg0, %c0_i32 : i32, i32, i32
  }
}

</mosaic_0001>

<bundles_post_ra>
// kernel: tpu_custom_call.1
= control target key start
LH: loop header
LB: loop body
LE: loop exit
PB: predicated region body
PF: predicated region fallthrough
CT: control target
= control target key end

     0   :  { %9 = vsyncpa [#allocation5], 0  ;;  %s1930_s0 = inlined_call_operand.hbm [shape: f32[8,8,16], index: 0, kind: input, shape index: {}]   ;;  %s1931_s1 = inlined_call_operand.hbm [shape: f32[16,128], index: 1, kind: input, shape index: {}]   ;;  %s1932_s2 = inlined_call_operand.hbm [shape: f32[128,128], index: 2, kind: input, shape index: {}]   ;;  %s1933_s3 = inlined_call_operand.vmem [shape: f32[1,128], index: 3, kind: input, shape index: {}]   ;;  %s1934_s4 = inlined_call_operand.hbm [shape: f32[8,8,128], index: 4, kind: output, shape index: {}]  }
   0x1   :  { %10 = vsyncpa [#allocation8], 0 }
   0x2   :  { %11 = vsyncpa [#allocation6], 0  ;;  %s1635_s15 = smov [#allocation7]   ;;  %s1636_s17 = smov [#allocation4]  }
   0x3   :  { %s29_s16 = sshll.u32 %s1635_s15, 4  ;;  %s17_s18 = sshll.u32 %s1636_s17, 4  ;;  %s30_s16 = int_to_ptr.vmem [resolvable:$true] %s29_s16  ;;  %s1669_s18 = int_to_ptr.vmem [resolvable:$true] %s17_s18 }
   0x4   :  { %s1541_s21 = scalar_lea.hbm %s1931_s1, 256 }
   0x5   :  { %p1542_p0 = scmp.ne.s32.totalorder %s1931_s1, %s1541_s21  ;;  %p1545_p1 = scmp.lt.u32.totalorder %s1541_s21, %s1931_s1 }
   0x7   :  { %p1547_p2 = pnand %p1545_p1, %p1542_p0 }
   0x9   :  { %1550 = shalt.err (!%p1547_p2)
}
   0xa   :  { %s1551_s26 = scalar_lea.vmem %s30_s16, 256  ;;  %p1556_p4 = scmp.lt.s32.totalorder %s30_s16, %s30_s16 }
   0xb   :  { %p1552_p3 = scmp.ne.s32.totalorder %s30_s16, %s1551_s26  ;;  %p1557_p5 = scmp.lt.s32.totalorder %s1551_s26, %s1551_s26 }
   0xd   :  { %p1558_p6 = por %p1557_p5, %p1556_p4 }
   0xf   :  { %p1559_p7 = pnand %p1558_p6, %p1552_p3 }
  0x11   :  { %1562 = shalt.err (!%p1559_p7)
}
  0x12   :  { %s1637_s27 = smov 128   ;;  %s1638_s28 = smov 8  }
  0x13   :  { %35 = dma.hbm_to_vmem [thread:$0]  %s1931_s1, 256, %s30_s16, [#allocation8], %s1637_s27, %s1637_s27, %s1638_s28  }
  0x14   :  { %s1563_s7 = scalar_lea.hbm %s1930_s0, 1024 }
  0x15   :  { %p1564_p8 = scmp.ne.s32.totalorder %s1930_s0, %s1563_s7  ;;  %p1567_p9 = scmp.lt.u32.totalorder %s1563_s7, %s1930_s0 }
  0x17   :  { %p1569_p10 = pnand %p1567_p9, %p1564_p8 }
  0x19   :  { %1572 = shalt.err (!%p1569_p10)
}
  0x1a   :  { %s1573_s12 = scalar_lea.vmem %s1669_s18, 1024  ;;  %p1578_p12 = scmp.lt.s32.totalorder %s1669_s18, %s1669_s18 }
  0x1b   :  { %p1574_p11 = scmp.ne.s32.totalorder %s1669_s18, %s1573_s12  ;;  %p1579_p13 = scmp.lt.s32.totalorder %s1573_s12, %s1573_s12 }
  0x1d   :  { %p1580_p0 = por %p1579_p13, %p1578_p12 }
  0x1f   :  { %p1581_p1 = pnand %p1580_p0, %p1574_p11 }
  0x21   :  { %1584 = shalt.err (!%p1581_p1)
}
  0x22   :  { %23 = dma.hbm_to_vmem [thread:$0]  %s1930_s0, 1024, %s1669_s18, [#allocation5], %s1637_s27, %s1637_s27, %s1638_s28  }
  0x23   :  { %s1639_s14 = smov [#allocation9]   ;;  %s1585_s19 = scalar_lea.hbm %s1932_s2, 2048 }
  0x24   :  { %s41_s15 = sshll.u32 %s1639_s14, 4  ;;  %p1586_p2 = scmp.ne.s32.totalorder %s1932_s2, %s1585_s19  ;;  %s42_s15 = int_to_ptr.vmem [resolvable:$true] %s41_s15 }
  0x25   :  { %p1589_p3 = scmp.lt.u32.totalorder %s1585_s19, %s1932_s2 }
  0x27   :  { %p1591_p4 = pnand %p1589_p3, %p1586_p2 }
  0x29   :  { %1594 = shalt.err (!%p1591_p4)
}
  0x2a   :  { %s1595_s24 = scalar_lea.vmem %s42_s15, 2048  ;;  %p1600_p6 = scmp.lt.s32.totalorder %s42_s15, %s42_s15 }
  0x2b   :  { %p1596_p5 = scmp.ne.s32.totalorder %s42_s15, %s1595_s24  ;;  %p1601_p7 = scmp.lt.s32.totalorder %s1595_s24, %s1595_s24 }
  0x2d   :  { %p1602_p8 = por %p1601_p7, %p1600_p6 }
  0x2f   :  { %p1603_p9 = pnand %p1602_p8, %p1596_p5 }
  0x31   :  { %1606 = shalt.err (!%p1603_p9)
}
  0x32   :  { %47 = dma.hbm_to_vmem [thread:$0]  %s1932_s2, 2048, %s42_s15, [#allocation8], %s1637_s27, %s1637_s27, %s1638_s28  }
  0x33   :  { %1629 = dma.done.wait [#allocation5], 1024  }
  0x34   :  { %1630 = vsyncadd [#allocation5], 4294966272 }
  0x35   :  { %1631 = dma.done.wait [#allocation8], 2304  }
  0x36   :  { %1632 = vsyncadd [#allocation8], 4294964992  ;;  %v1640_v0 = vmov 0.0|0.0   ;;  %vm1641_vm0 = vmmov 0   ;;  %v1642_v1 = vmov 0.0   ;;  %v227_v2 = vld [vmem:[#allocation9] sm:$0xff] }
  0x37   :  { %1324 = vmatprep.subr.bf16.mxu1 %v1640_v0  ;;  %1072 = vmatprep.mubr.msk.f32.mxu1 %vm1641_vm0, %v1642_v1  ;;  %v228_v3 = vld [vmem:[#allocation9 + $0x8] sm:$0xff]  ;;  %v229_v4 = vld [vmem:[#allocation9 + $0x10] sm:$0xff]  ;;  %v230_v6 = vld [vmem:[#allocation9 + $0x18] sm:$0xff]  ;;  %vm74_vm1 = vcmask 130048  }
  0x38   :  { %v1724_v5 = vpack.c.bf16 %v228_v3, %v227_v2  ;;  %v1727_v7 = vpack.c.bf16 %v230_v6, %v229_v4  ;;  %v231_v8 = vld [vmem:[#allocation9 + $0x20] sm:$0xff]  ;;  %v232_v9 = vld [vmem:[#allocation9 + $0x28] sm:$0xff]  ;;  %v72_v10 = vld [vmem:[#allocation7] sm:$0xff] }
  0x39   :  { %v73_v11 = vld [vmem:[#allocation7 + $0x8] sm:$0xff]  ;;  %v64_v13 = vld [vmem:[#allocation4] sm:$0xff]  ;;  %v1732_v14 = vpack.c.bf16 %v232_v9, %v231_v8  ;;  %v235_v19 = vld [vmem:[#allocation9 + $0x40] sm:$0xff] }
  0x3a   :  { %1326 = vmatpush3.bf16.msra.mxu1 %v1724_v5  ;;  %v1320_v12 = vpack.c.bf16 %v73_v11, %v72_v10  ;;  %1028 = vmatprep.mubr.msk.f32.mxu0 %vm74_vm1, %v64_v13  ;;  %v233_v15 = vld [vmem:[#allocation9 + $0x30] sm:$0xff]  ;;  %v234_v16 = vld [vmem:[#allocation9 + $0x38] sm:$0xff]  ;;  %v236_v20 = vld [vmem:[#allocation9 + $0x48] sm:$0xff] }
  0x3b   :  { %1327 = vmatprep.subr.bf16.mxu1 %v1640_v0  ;;  %v65_v17 = vld [vmem:[#allocation4 + $0x8] sm:$0xff]  ;;  %v1737_v18 = vpack.c.bf16 %v234_v16, %v233_v15  ;;  %v1744_v21 = vpack.c.bf16 %v236_v20, %v235_v19  ;;  %v237_v22 = vld [vmem:[#allocation9 + $0x50] sm:$0xff]  ;;  %v239_v25 = vld [vmem:[#allocation9 + $0x60] sm:$0xff] }
  0x3c   :  { %1321 = vmatprep.subr.bf16.mxu0 %v1320_v12  ;;  %v238_v23 = vld [vmem:[#allocation9 + $0x58] sm:$0xff]  ;;  %v240_v26 = vld [vmem:[#allocation9 + $0x68] sm:$0xff]  ;;  %v241_v28 = vld [vmem:[#allocation9 + $0x70] sm:$0xff] }
  0x3d   :  { %1323 = vmatpush3.bf16.msra.mxu0 %v1320_v12  ;;  %v1750_v24 = vpack.c.bf16 %v238_v23, %v237_v22  ;;  %v1756_v27 = vpack.c.bf16 %v240_v26, %v239_v25  ;;  %v242_v29 = vld [vmem:[#allocation9 + $0x78] sm:$0xff]  ;;  %v66_v31 = vld [vmem:[#allocation4 + $0x10] sm:$0xff]  ;;  %v67_v32 = vld [vmem:[#allocation4 + $0x18] sm:$0xff] }
  0x3e   :  { %1329 = vmatpush3.bf16.msra.mxu1 %v1727_v7  ;;  %1348 = vmatprep.subr.bf16.mxu0 %v1640_v0  ;;  %v1762_v30 = vpack.c.bf16 %v242_v29, %v241_v28  ;;  %v68_v33 = vld [vmem:[#allocation4 + $0x20] sm:$0xff]  ;;  %v69_v34 = vld [vmem:[#allocation4 + $0x28] sm:$0xff]  ;;  %v70_v35 = vld [vmem:[#allocation4 + $0x30] sm:$0xff] }
  0x3f   :  { %1330 = vmatprep.subr.bf16.mxu1 %v1640_v0  ;;  %v71_v36 = vld [vmem:[#allocation4 + $0x38] sm:$0xff]  ;;  %v1805_v39 = vld [vmem:[%s1933_s3] ss:$0 sm:$0xff]  ;;  %s1643_s3 = smov [#allocation10]  }
  0x40   :  { %1029 = vmatmul.mubr.msk.f32.vlgmr.msra.gmra.mrb[0].mxu0 %vm74_vm1, %v65_v17  ;;  %s856_s26 = sshll.u32 %s1643_s3, 4  ;;  %s857_s26 = int_to_ptr.vmem [resolvable:$true] %s856_s26 }
  0x41   :  { %1350 = vmatpush3.bf16.msra.mxu0 %v1724_v5  ;;  %1031 = vmatprep.mubr.msk.f32.mxu0 %vm74_vm1, %v66_v31  ;;  %s1607_s29 = scalar_lea.vmem %s857_s26, 1024  ;;  %p1612_p11 = scmp.lt.s32.totalorder %s857_s26, %s857_s26 }
  0x42   :  { %1332 = vmatpush3.bf16.msra.mxu1 %v1732_v14  ;;  %1351 = vmatprep.subr.bf16.mxu0 %v1640_v0  ;;  %p1608_p10 = scmp.ne.s32.totalorder %s857_s26, %s1607_s29  ;;  %p1613_p12 = scmp.lt.s32.totalorder %s1607_s29, %s1607_s29 }
  0x43   :  { %1333 = vmatprep.subr.bf16.mxu1 %v1640_v0 }
  0x44   :  { %1032 = vmatmul.mubr.msk.f32.gmra.mrb[2].mxu0 %vm74_vm1, %v67_v32  ;;  %p1614_p13 = por %p1613_p12, %p1612_p11 }
  0x45   :  { %1353 = vmatpush3.bf16.msra.mxu0 %v1727_v7  ;;  %1034 = vmatprep.mubr.msk.f32.mxu0 %vm74_vm1, %v68_v33 }
  0x46   :  { %1335 = vmatpush3.bf16.msra.mxu1 %v1737_v18  ;;  %1354 = vmatprep.subr.bf16.mxu0 %v1640_v0  ;;  %p1615_p0 = pnand %p1614_p13, %p1608_p10 }
  0x47   :  { %1336 = vmatprep.subr.bf16.mxu1 %v1640_v0 }
  0x48   :  { %1035 = vmatmul.mubr.msk.f32.gmra.mrb[4].mxu0 %vm74_vm1, %v69_v34 }
  0x49   :  { %1356 = vmatpush3.bf16.msra.mxu0 %v1732_v14  ;;  %1037 = vmatprep.mubr.msk.f32.mxu0 %vm74_vm1, %v70_v35 }
  0x4a   :  { %1338 = vmatpush3.bf16.msra.mxu1 %v1744_v21  ;;  %1357 = vmatprep.subr.bf16.mxu0 %v1640_v0 }
  0x4b   :  { %1339 = vmatprep.subr.bf16.mxu1 %v1640_v0 }
  0x4c   :  { %1038 = vmatmul.mubr.msk.f32.gmra.mrb[6].mxu0 %vm74_vm1, %v71_v36 }
  0x4d   :  { %1359 = vmatpush3.bf16.msra.mxu0 %v1737_v18  ;;  %1107 = vmatprep.mubr.msk.f32.mxu0 %vm1641_vm0, %v1642_v1 }
  0x4e   :  { %1341 = vmatpush3.bf16.msra.mxu1 %v1750_v24  ;;  %1360 = vmatprep.subr.bf16.mxu0 %v1640_v0 }
  0x4f   :  { %1342 = vmatprep.subr.bf16.mxu1 %v1640_v0 }
  0x51   :  { %1362 = vmatpush3.bf16.msra.mxu0 %v1744_v21 }
  0x52   :  { %1344 = vmatpush3.bf16.msra.mxu1 %v1756_v27  ;;  %1363 = vmatprep.subr.bf16.mxu0 %v1640_v0 }
  0x53   :  { %1345 = vmatprep.subr.bf16.mxu1 %v1640_v0 }
  0x55   :  { %1365 = vmatpush3.bf16.msra.mxu0 %v1750_v24 }
  0x56   :  { %1347 = vmatpush3.bf16.msra.mxu1 %v1762_v30  ;;  %1366 = vmatprep.subr.bf16.mxu0 %v1640_v0 }
  0x57   :  { %1372 = vmatprep.subr.bf16.mxu1 %v1640_v0 }
  0x59   :  { %1073 = vmatmul.mubr.f32.vlgmr.msra.gmra.mrb[0].mxu1 %v1642_v1  ;;  %1368 = vmatpush3.bf16.msra.mxu0 %v1756_v27 }
  0x5a   :  { %1374 = vmatpush3.bf16.msra.mxu1 %v1724_v5  ;;  %1142 = vmatprep.mubr.msk.f32.mxu1 %vm1641_vm0, %v1642_v1 }
  0x5b   :  { %1375 = vmatprep.subr.bf16.mxu1 %v1640_v0  ;;  %1369 = vmatprep.subr.bf16.mxu0 %v1640_v0 }
  0x5d   :  { %1371 = vmatpush3.bf16.msra.mxu0 %v1762_v30 }
  0x5e   :  { %1377 = vmatpush3.bf16.msra.mxu1 %v1727_v7  ;;  %1396 = vmatprep.subr.bf16.mxu0 %v1640_v0 }
  0x5f   :  { %1378 = vmatprep.subr.bf16.mxu1 %v1640_v0 }
  0x62   :  { %1380 = vmatpush3.bf16.msra.mxu1 %v1732_v14 }
  0x63   :  { %1381 = vmatprep.subr.bf16.mxu1 %v1640_v0 }
  0x66   :  { %1383 = vmatpush3.bf16.msra.mxu1 %v1737_v18 }
  0x67   :  { %1384 = vmatprep.subr.bf16.mxu1 %v1640_v0 }
  0x6a   :  { %1386 = vmatpush3.bf16.msra.mxu1 %v1744_v21 }
  0x6b   :  { %1387 = vmatprep.subr.bf16.mxu1 %v1640_v0 }
  0x6e   :  { %1389 = vmatpush3.bf16.msra.mxu1 %v1750_v24 }
  0x6f   :  { %1390 = vmatprep.subr.bf16.mxu1 %v1640_v0 }
  0x72   :  { %1392 = vmatpush3.bf16.msra.mxu1 %v1756_v27 }
  0x73   :  { %1393 = vmatprep.subr.bf16.mxu1 %v1640_v0 }
  0x76   :  { %1395 = vmatpush3.bf16.msra.mxu1 %v1762_v30 }
  0x77   :  { %1420 = vmatprep.subr.bf16.mxu1 %v1640_v0 }
 0x113   :  { %v1030_v37 = vpop.f32.mrb[0].mxu0 }
 0x114   :  { %v165_v38 = vpop.f32.mrb[1].mxu0  ;;  %v212_v51 = vadd.f32 %v1030_v37, %v1805_v39 }
 0x115   :  { %v211_v40 = vadd.f32 %v1805_v39, %v165_v38 }
 0x117   :  { %v1033_v45 = vpop.f32.mrb[2].mxu0 }
 0x118   :  { %v175_v46 = vpop.f32.mrb[3].mxu0  ;;  %v214_v61 = vadd.f32 %v1033_v45, %v1805_v39 }
 0x119   :  { %v213_v56 = vadd.f32 %v1805_v39, %v175_v46 }
 0x11b   :  { %v1826_v47 = vpop.f32.mrb[4].mxu0 }
 0x11c   :  { %v1828_v48 = vpop.f32.mrb[5].mxu0 }
 0x11d   :  { %v215_v4 = vadd.f32 %v1805_v39, %v1828_v48 }
 0x11f   :  { %v1830_v49 = vpop.f32.mrb[6].mxu0 }
 0x120   :  { %v1832_v50 = vpop.f32.mrb[7].mxu0  ;;  %v218_v17 = vadd.f32 %v1830_v49, %v1805_v39 }
 0x121   :  { %v217_v13 = vadd.f32 %v1805_v39, %v1832_v50 }
 0x12c   :  { %v311_v41 = vpop.f32.mrb[0].mxu1 }
 0x12d   :  { %v315_v42 = vadd.f32 %v311_v41, %v211_v40  ;;  %v1074_v43 = vpop.f32.mrb[1].mxu1 }
 0x12f   :  { %1525 = vtanh.f32 %v315_v42 }
 0x139   :  { %v1526_v44 = vpop.eup %1525 }
 0x13a   :  { %317 = vst [vmem:[#allocation10] sm:$0xff] %v1526_v44  ;;  %1108 = vmatmul.mubr.f32.vlgmr.msra.gmra.mrb[8].mxu0 %v1526_v44 }
 0x13b   :  { %1398 = vmatpush3.bf16.msra.mxu0 %v1724_v5  ;;  %1177 = vmatprep.mubr.msk.f32.mxu0 %vm1641_vm0, %v1642_v1 }
 0x13c   :  { %1399 = vmatprep.subr.bf16.mxu0 %v1640_v0 }
 0x13f   :  { %1401 = vmatpush3.bf16.msra.mxu0 %v1727_v7 }
 0x140   :  { %1402 = vmatprep.subr.bf16.mxu0 %v1640_v0 }
 0x143   :  { %1404 = vmatpush3.bf16.msra.mxu0 %v1732_v14 }
 0x144   :  { %1405 = vmatprep.subr.bf16.mxu0 %v1640_v0 }
 0x147   :  { %1407 = vmatpush3.bf16.msra.mxu0 %v1737_v18 }
 0x148   :  { %1408 = vmatprep.subr.bf16.mxu0 %v1640_v0 }
 0x14b   :  { %1410 = vmatpush3.bf16.msra.mxu0 %v1744_v21 }
 0x14c   :  { %1411 = vmatprep.subr.bf16.mxu0 %v1640_v0 }
 0x14f   :  { %1413 = vmatpush3.bf16.msra.mxu0 %v1750_v24 }
 0x150   :  { %1414 = vmatprep.subr.bf16.mxu0 %v1640_v0 }
 0x153   :  { %1416 = vmatpush3.bf16.msra.mxu0 %v1756_v27 }
 0x154   :  { %1417 = vmatprep.subr.bf16.mxu0 %v1640_v0 }
 0x157   :  { %1419 = vmatpush3.bf16.msra.mxu0 %v1762_v30 }
 0x158   :  { %1444 = vmatprep.subr.bf16.mxu0 %v1640_v0 }
 0x20d   :  { %v386_v52 = vpop.f32.mrb[8].mxu0 }
 0x20e   :  { %v390_v53 = vadd.f32 %v386_v52, %v212_v51  ;;  %v1109_v54 = vpop.f32.mrb[9].mxu0 }
 0x210   :  { %1527 = vtanh.f32 %v390_v53 }
 0x21a   :  { %v1528_v55 = vpop.eup %1527 }
 0x21b   :  { %393 = vst [vmem:[#allocation10 + $0x8] sm:$0xff] %v1528_v55  ;;  %1143 = vmatmul.mubr.f32.vlgmr.msra.gmra.mrb[2].mxu1 %v1528_v55 }
 0x21c   :  { %1422 = vmatpush3.bf16.msra.mxu1 %v1724_v5  ;;  %1212 = vmatprep.mubr.msk.f32.mxu1 %vm1641_vm0, %v1642_v1 }
 0x21d   :  { %1423 = vmatprep.subr.bf16.mxu1 %v1640_v0 }
 0x220   :  { %1425 = vmatpush3.bf16.msra.mxu1 %v1727_v7 }
 0x221   :  { %1426 = vmatprep.subr.bf16.mxu1 %v1640_v0 }
 0x224   :  { %1428 = vmatpush3.bf16.msra.mxu1 %v1732_v14 }
 0x225   :  { %1429 = vmatprep.subr.bf16.mxu1 %v1640_v0 }
 0x228   :  { %1431 = vmatpush3.bf16.msra.mxu1 %v1737_v18 }
 0x229   :  { %1432 = vmatprep.subr.bf16.mxu1 %v1640_v0 }
 0x22c   :  { %1434 = vmatpush3.bf16.msra.mxu1 %v1744_v21 }
 0x22d   :  { %1435 = vmatprep.subr.bf16.mxu1 %v1640_v0 }
 0x230   :  { %1437 = vmatpush3.bf16.msra.mxu1 %v1750_v24 }
 0x231   :  { %1438 = vmatprep.subr.bf16.mxu1 %v1640_v0 }
 0x234   :  { %1440 = vmatpush3.bf16.msra.mxu1 %v1756_v27 }
 0x235   :  { %1441 = vmatprep.subr.bf16.mxu1 %v1640_v0 }
 0x238   :  { %1443 = vmatpush3.bf16.msra.mxu1 %v1762_v30 }
 0x239   :  { %1468 = vmatprep.subr.bf16.mxu1 %v1640_v0 }
 0x2ee   :  { %v462_v57 = vpop.f32.mrb[2].mxu1 }
 0x2ef   :  { %v466_v58 = vadd.f32 %v462_v57, %v213_v56  ;;  %v1144_v59 = vpop.f32.mrb[3].mxu1 }
 0x2f1   :  { %1529 = vtanh.f32 %v466_v58 }
 0x2fb   :  { %v1530_v60 = vpop.eup %1529 }
 0x2fc   :  { %469 = vst [vmem:[#allocation10 + $0x10] sm:$0xff] %v1530_v60  ;;  %1178 = vmatmul.mubr.f32.vlgmr.msra.gmra.mrb[10].mxu0 %v1530_v60 }
 0x2fd   :  { %1446 = vmatpush3.bf16.msra.mxu0 %v1724_v5  ;;  %1247 = vmatprep.mubr.msk.f32.mxu0 %vm1641_vm0, %v1642_v1 }
 0x2fe   :  { %1447 = vmatprep.subr.bf16.mxu0 %v1640_v0 }
 0x301   :  { %1449 = vmatpush3.bf16.msra.mxu0 %v1727_v7 }
 0x302   :  { %1450 = vmatprep.subr.bf16.mxu0 %v1640_v0 }
 0x305   :  { %1452 = vmatpush3.bf16.msra.mxu0 %v1732_v14 }
 0x306   :  { %1453 = vmatprep.subr.bf16.mxu0 %v1640_v0 }
 0x309   :  { %1455 = vmatpush3.bf16.msra.mxu0 %v1737_v18 }
 0x30a   :  { %1456 = vmatprep.subr.bf16.mxu0 %v1640_v0 }
 0x30d   :  { %1458 = vmatpush3.bf16.msra.mxu0 %v1744_v21 }
 0x30e   :  { %1459 = vmatprep.subr.bf16.mxu0 %v1640_v0 }
 0x311   :  { %1461 = vmatpush3.bf16.msra.mxu0 %v1750_v24 }
 0x312   :  { %1462 = vmatprep.subr.bf16.mxu0 %v1640_v0 }
 0x315   :  { %1464 = vmatpush3.bf16.msra.mxu0 %v1756_v27 }
 0x316   :  { %1465 = vmatprep.subr.bf16.mxu0 %v1640_v0 }
 0x319   :  { %1467 = vmatpush3.bf16.msra.mxu0 %v1762_v30 }
 0x31a   :  { %1492 = vmatprep.subr.bf16.mxu0 %v1640_v0 }
 0x3cf   :  { %v538_v62 = vpop.f32.mrb[10].mxu0 }
 0x3d0   :  { %v542_v63 = vadd.f32 %v538_v62, %v214_v61  ;;  %v1179_v2 = vpop.f32.mrb[11].mxu0 }
 0x3d2   :  { %1531 = vtanh.f32 %v542_v63 }
 0x3dc   :  { %v1532_v3 = vpop.eup %1531 }
 0x3dd   :  { %545 = vst [vmem:[#allocation10 + $0x18] sm:$0xff] %v1532_v3  ;;  %1213 = vmatmul.mubr.f32.vlgmr.msra.gmra.mrb[4].mxu1 %v1532_v3 }
 0x3de   :  { %1470 = vmatpush3.bf16.msra.mxu1 %v1724_v5  ;;  %1282 = vmatprep.mubr.msk.f32.mxu1 %vm1641_vm0, %v1642_v1 }
 0x3df   :  { %1471 = vmatprep.subr.bf16.mxu1 %v1640_v0 }
 0x3e2   :  { %1473 = vmatpush3.bf16.msra.mxu1 %v1727_v7 }
 0x3e3   :  { %1474 = vmatprep.subr.bf16.mxu1 %v1640_v0 }
 0x3e6   :  { %1476 = vmatpush3.bf16.msra.mxu1 %v1732_v14 }
 0x3e7   :  { %1477 = vmatprep.subr.bf16.mxu1 %v1640_v0 }
 0x3ea   :  { %1479 = vmatpush3.bf16.msra.mxu1 %v1737_v18 }
 0x3eb   :  { %1480 = vmatprep.subr.bf16.mxu1 %v1640_v0 }
 0x3ee   :  { %1482 = vmatpush3.bf16.msra.mxu1 %v1744_v21 }
 0x3ef   :  { %1483 = vmatprep.subr.bf16.mxu1 %v1640_v0 }
 0x3f2   :  { %1485 = vmatpush3.bf16.msra.mxu1 %v1750_v24 }
 0x3f3   :  { %1486 = vmatprep.subr.bf16.mxu1 %v1640_v0 }
 0x3f6   :  { %1488 = vmatpush3.bf16.msra.mxu1 %v1756_v27 }
 0x3f7   :  { %1489 = vmatprep.subr.bf16.mxu1 %v1640_v0 }
 0x3fa   :  { %1491 = vmatpush3.bf16.msra.mxu1 %v1762_v30 }
 0x4b0   :  { %v614_v6 = vpop.f32.mrb[4].mxu1 }
 0x4b1   :  { %v618_v8 = vadd.f32 %v614_v6, %v215_v4  ;;  %v1214_v9 = vpop.f32.mrb[5].mxu1 }
 0x4b3   :  { %1533 = vtanh.f32 %v618_v8 }
 0x4bd   :  { %v1534_v10 = vpop.eup %1533 }
 0x4be   :  { %621 = vst [vmem:[#allocation10 + $0x20] sm:$0xff] %v1534_v10  ;;  %1248 = vmatmul.mubr.f32.vlgmr.msra.gmra.mrb[12].mxu0 %v1534_v10 }
 0x4bf   :  { %1494 = vmatpush3.bf16.msra.mxu0 %v1724_v5  ;;  %1317 = vmatprep.mubr.msk.f32.mxu0 %vm1641_vm0, %v1642_v1  ;;  %v216_v1 = vadd.f32 %v1826_v47, %v1805_v39 }
 0x4c0   :  { %1495 = vmatprep.subr.bf16.mxu0 %v1640_v0 }
 0x4c3   :  { %1497 = vmatpush3.bf16.msra.mxu0 %v1727_v7 }
 0x4c4   :  { %1498 = vmatprep.subr.bf16.mxu0 %v1640_v0 }
 0x4c7   :  { %1500 = vmatpush3.bf16.msra.mxu0 %v1732_v14 }
 0x4c8   :  { %1501 = vmatprep.subr.bf16.mxu0 %v1640_v0 }
 0x4cb   :  { %1503 = vmatpush3.bf16.msra.mxu0 %v1737_v18 }
 0x4cc   :  { %1504 = vmatprep.subr.bf16.mxu0 %v1640_v0 }
 0x4cf   :  { %1506 = vmatpush3.bf16.msra.mxu0 %v1744_v21 }
 0x4d0   :  { %1507 = vmatprep.subr.bf16.mxu0 %v1640_v0 }
 0x4d3   :  { %1509 = vmatpush3.bf16.msra.mxu0 %v1750_v24 }
 0x4d4   :  { %1510 = vmatprep.subr.bf16.mxu0 %v1640_v0 }
 0x4d7   :  { %1512 = vmatpush3.bf16.msra.mxu0 %v1756_v27 }
 0x4d8   :  { %1513 = vmatprep.subr.bf16.mxu0 %v1640_v0 }
 0x4db   :  { %1515 = vmatpush3.bf16.msra.mxu0 %v1762_v30 }
 0x591   :  { %v690_v5 = vpop.f32.mrb[12].mxu0 }
 0x592   :  { %v694_v7 = vadd.f32 %v690_v5, %v216_v1  ;;  %v1249_v11 = vpop.f32.mrb[13].mxu0 }
 0x594   :  { %1535 = vtanh.f32 %v694_v7 }
 0x59e   :  { %v1536_v12 = vpop.eup %1535 }
 0x59f   :  { %697 = vst [vmem:[#allocation10 + $0x28] sm:$0xff] %v1536_v12  ;;  %1283 = vmatmul.mubr.f32.vlgmr.msra.gmra.mrb[6].mxu1 %v1536_v12 }
 0x672   :  { %v766_v14 = vpop.f32.mrb[6].mxu1 }
 0x673   :  { %v770_v15 = vadd.f32 %v766_v14, %v217_v13  ;;  %v1284_v16 = vpop.f32.mrb[7].mxu1 }
 0x675   :  { %1537 = vtanh.f32 %v770_v15 }
 0x67f   :  { %v1538_v0 = vpop.eup %1537 }
 0x680   :  { %773 = vst [vmem:[#allocation10 + $0x30] sm:$0xff] %v1538_v0  ;;  %1318 = vmatmul.mubr.f32.vlgmr.msra.gmra.mrb[14].mxu0 %v1538_v0 }
 0x753   :  { %v842_v18 = vpop.f32.mrb[14].mxu0 }
 0x754   :  { %v846_v19 = vadd.f32 %v842_v18, %v218_v17  ;;  %v1319_v20 = vpop.f32.mrb[15].mxu0 }
 0x756   :  { %1539 = vtanh.f32 %v846_v19 }
 0x760   :  { %v1540_v21 = vpop.eup %1539 }
 0x761   :  { %849 = vst [vmem:[#allocation10 + $0x38] sm:$0xff] %v1540_v21 }
 0x762   :  { %1618 = shalt.err (!%p1615_p0)
}
 0x763   :  { %s1619_s6 = scalar_lea.hbm %s1934_s4, 1024 }
 0x764   :  { %p1620_p1 = scmp.ne.s32.totalorder %s1934_s4, %s1619_s6  ;;  %p1623_p2 = scmp.lt.u32.totalorder %s1619_s6, %s1934_s4 }
 0x766   :  { %p1625_p3 = pnand %p1623_p2, %p1620_p1 }
 0x768   :  { %1628 = shalt.err (!%p1625_p3)
}
 0x769   :  { %862 = dma.vmem_to_hbm [thread:$0]  %s857_s26, 1024, %s1934_s4, [#allocation6], %s1637_s27, %s1637_s27, %s1638_s28  }
 0x76a   :  { %1633 = dma.done.wait [#allocation6], 1024  }
 0x76b   :  { %1634 = vsyncadd [#allocation6], 4294966272 }
 0x76c   :  { %866 = vsyncpa [#allocation5], 1 }
 0x76d   :  { %867 = vsyncpa [#allocation8], 1 }
 0x76e   :  { %868 = vsyncpa [#allocation6], 1 }

</bundles_post_ra>
